<compile_context>
chip_gen: v7x
topology: tpu7x:2x2x1
jax: 0.10.0
libtpu: 0.0.40
codegen_flags: <defaults>
</compile_context>

<pallas_src>
import math
from functools import partial

import jax
import jax.numpy as jnp
from jax.experimental import pallas as pl
from jax.experimental.pallas import tpu as pltpu


LANE = 128       # feature dims padded to 128 lanes -> unmasked stores, full MXU columns
ROW_TILE = 256   # MXU-friendly row tile on v6e/v7x (2x256x256 MXU)
                 # TODO(synk): prefer 128-row tiles on v5e (4x128x128 MXU, 16 MiB scoped VMEM).


# --------------------------------------------------------------------------- sizing helpers
def _rup(x, m):
    return -(-x // m) * m


def _pad_nodes(n):
    """Padded node count: ROW_TILE multiple for large graphs (row tiling),
    else multiple of 8 (sublane) handled as a single full tile."""
    if n >= ROW_TILE:
        return _rup(n, ROW_TILE)
    return max(8, _rup(n, 8))


def _row_tile(npad):
    return ROW_TILE if (npad > ROW_TILE and npad % ROW_TILE == 0) else npad


def _nbytes(shape, dtype):
    return math.prod(shape) * jnp.dtype(dtype).itemsize


def _vmem_limit(blocks):
    """Scoped-VMEM limit sized from the double-buffered tile footprint (+4 MiB slack),
    clamped to [32 MiB, 64 MiB] (64 MiB = v7x physical VMEM per TC)."""
    est = 2 * sum(_nbytes(s, d) for s, d in blocks) + (4 << 20)
    return int(min(max(est, 32 << 20), 64 << 20))


def _pad2(x, rows, cols):
    return jnp.pad(x, ((0, rows - x.shape[0]), (0, cols - x.shape[1])))


# --------------------------------------------------------------------------- kernels
def _gcn_first_kernel(dr_ref, dc_ref, a_ref, x_ref, w_ref, b_ref, an_ref, h_ref):
    """First GCNConv of a pair (no activation). Builds the normalized adjacency
    once per level (self loop folded algebraically -> no eye/iota), emits it in
    bf16 for downstream streaming, and computes H = A_hat_norm @ X @ W + b
    (bf16 MXU inputs, f32 accumulation)."""
    i = pl.program_id(0)
    tm = a_ref.shape[0]
    dr = dr_ref[...]                                             # (tm, 1) deg^-1/2, tile rows
    a_norm = (a_ref[...] * dr) * dc_ref[...]                     # D^-1/2 A D^-1/2 (zero diag)
    an_bf = a_norm.astype(jnp.bfloat16)
    an_ref[...] = an_bf
    row0 = pl.multiple_of(i * tm, 8)
    x_rows = x_ref[pl.ds(row0, tm), :]                           # this tile's rows of X
    m = jnp.dot(an_bf, x_ref[...].astype(jnp.bfloat16),
                preferred_element_type=jnp.float32) + (dr * dr) * x_rows   # + folded self loop
    h_ref[...] = jnp.dot(m.astype(jnp.bfloat16), w_ref[...].astype(jnp.bfloat16),
                         preferred_element_type=jnp.float32) + b_ref[...]


def _gcn_second_kernel(dr_ref, an_ref, h_ref, w_ref, b_ref, p_ref, y_ref, *, score_col):
    """Second GCNConv of a pair + ReLU, streaming the precomputed bf16 A_norm.
    The TopKPooling score tanh(y . p/||p||) (VPU multiply + lane reduce) is packed
    into the spare lane `score_col` of the zero-padded output slab, keeping every
    store lane-dense (no [N,1] masked vst)."""
    i = pl.program_id(0)
    tm = an_ref.shape[0]
    dr = dr_ref[...]
    row0 = pl.multiple_of(i * tm, 8)
    h_rows = h_ref[pl.ds(row0, tm), :]
    m = jnp.dot(an_ref[...], h_ref[...].astype(jnp.bfloat16),
                preferred_element_type=jnp.float32) + (dr * dr) * h_rows
    y = jnp.maximum(jnp.dot(m.astype(jnp.bfloat16), w_ref[...].astype(jnp.bfloat16),
                            preferred_element_type=jnp.float32) + b_ref[...], 0.0)
    s = jnp.tanh(jnp.sum(y * p_ref[...], axis=-1, keepdims=True))
    lane = jax.lax.broadcasted_iota(jnp.int32, y.shape, 1)
    y_ref[...] = jnp.where(lane == score_col, s, y)


def _tail_kernel(dr_ref, an_ref, y_ref, we_ref, be_ref, wl_ref, bl_ref, mask_ref,
                 z_ref, gemb_ref, pred_ref):
    """Final-level tail: conv_to_gr_embedding + ReLU (streaming bf16 A_norm),
    masked global_mean_pool accumulated into the resident gemb output block, and
    the Linear head applied once at the last row tile."""
    i = pl.program_id(0)
    tm = an_ref.shape[0]
    dr = dr_ref[...]
    row0 = pl.multiple_of(i * tm, 8)
    y_rows = y_ref[pl.ds(row0, tm), :]
    m = jnp.dot(an_ref[...], y_ref[...].astype(jnp.bfloat16),
                preferred_element_type=jnp.float32) + (dr * dr) * y_rows
    z = jnp.maximum(jnp.dot(m.astype(jnp.bfloat16), we_ref[...].astype(jnp.bfloat16),
                            preferred_element_type=jnp.float32) + be_ref[...], 0.0)
    z_ref[...] = z

    @pl.when(i == 0)
    def _():
        gemb_ref[...] = jnp.zeros_like(gemb_ref)

    # mask holds 1/n_real for real rows, 0 for padded rows -> masked mean pool.
    gemb_ref[...] += jnp.sum(z * mask_ref[...], axis=0, keepdims=True)

    @pl.when(i == pl.num_programs(0) - 1)
    def _():
        # TODO(synk): F.dropout(p=0.5, training=...) treated as eval-mode identity.
        pred_ref[...] = jnp.dot(gemb_ref[...], wl_ref[...],
                                preferred_element_type=jnp.float32) + bl_ref[...]


def _adj_sq_kernel(a_ik_ref, a_kj_ref, a_ij_ref, o_ref, acc_ref):
    """augment_adj as dense algebra: with zero-diag A, remove/add self loops then
    spspmm then remove self loops equals  offdiag(A @ A + 2A).  fp32 MXU operands
    (common-neighbour counts can exceed 256 after repeated squaring; bf16 would
    silently corrupt the adjacency and the degree normalization)."""
    i, j, k = pl.program_id(0), pl.program_id(1), pl.program_id(2)

    @pl.when(k == 0)
    def _():
        acc_ref[...] = jnp.zeros_like(acc_ref)

    acc_ref[...] += jnp.dot(a_ik_ref[...], a_kj_ref[...],
                            preferred_element_type=jnp.float32)

    @pl.when(k == pl.num_programs(2) - 1)
    def _():
        tm, tn = o_ref.shape
        rg = i * tm + jax.lax.broadcasted_iota(jnp.int32, (tm, tn), 0)
        cg = j * tn + jax.lax.broadcasted_iota(jnp.int32, (tm, tn), 1)
        o_ref[...] = jnp.where(rg == cg, 0.0, acc_ref[...] + 2.0 * a_ij_ref[...])


# --------------------------------------------------------------------------- wrappers
def gcn_first(a, dinv, x, w, b):
    npad = a.shape[0]
    cin, cout = x.shape[1], w.shape[1]
    tm = _row_tile(npad)
    blocks = [((tm, 1), jnp.float32), ((1, npad), jnp.float32),
              ((tm, npad), jnp.float32), ((npad, cin), jnp.float32),
              ((cin, cout), jnp.float32), ((1, cout), jnp.float32),
              ((tm, npad), jnp.bfloat16), ((tm, cout), jnp.float32)]
    return pl.pallas_call(
        _gcn_first_kernel,
        grid=(npad // tm,),
        in_specs=[pl.BlockSpec((tm, 1), lambda i: (i, 0)),
                  pl.BlockSpec((1, npad), lambda i: (0, 0)),
                  pl.BlockSpec((tm, npad), lambda i: (i, 0)),
                  pl.BlockSpec((npad, cin), lambda i: (0, 0)),
                  pl.BlockSpec((cin, cout), lambda i: (0, 0)),
                  pl.BlockSpec((1, cout), lambda i: (0, 0))],
        out_specs=(pl.BlockSpec((tm, npad), lambda i: (i, 0)),
                   pl.BlockSpec((tm, cout), lambda i: (i, 0))),
        out_shape=(jax.ShapeDtypeStruct((npad, npad), jnp.bfloat16),
                   jax.ShapeDtypeStruct((npad, cout), jnp.float32)),
        compiler_params=pltpu.CompilerParams(
            dimension_semantics=("parallel",),
            vmem_limit_bytes=_vmem_limit(blocks)),
    )(dinv.reshape(-1, 1), dinv.reshape(1, -1), a, x, w, b)


def gcn_second(an, dinv, h, w, b, p_hat, score_col):
    npad = an.shape[0]
    chid, cout = h.shape[1], w.shape[1]
    tm = _row_tile(npad)
    blocks = [((tm, 1), jnp.float32), ((tm, npad), jnp.bfloat16),
              ((npad, chid), jnp.float32), ((chid, cout), jnp.float32),
              ((1, cout), jnp.float32), ((1, cout), jnp.float32),
              ((tm, cout), jnp.float32)]
    return pl.pallas_call(
        partial(_gcn_second_kernel, score_col=score_col),
        grid=(npad // tm,),
        in_specs=[pl.BlockSpec((tm, 1), lambda i: (i, 0)),
                  pl.BlockSpec((tm, npad), lambda i: (i, 0)),
                  pl.BlockSpec((npad, chid), lambda i: (0, 0)),
                  pl.BlockSpec((chid, cout), lambda i: (0, 0)),
                  pl.BlockSpec((1, cout), lambda i: (0, 0)),
                  pl.BlockSpec((1, cout), lambda i: (0, 0))],
        out_specs=pl.BlockSpec((tm, cout), lambda i: (i, 0)),
        out_shape=jax.ShapeDtypeStruct((npad, cout), jnp.float32),
        compiler_params=pltpu.CompilerParams(
            dimension_semantics=("parallel",),
            vmem_limit_bytes=_vmem_limit(blocks)),
    )(dinv.reshape(-1, 1), an, h, w, b, p_hat)


def tail(an, dinv, y, we, be, wl, bl, mask):
    npad = an.shape[0]
    chid, cemb, cout = y.shape[1], we.shape[1], wl.shape[1]
    tm = _row_tile(npad)
    blocks = [((tm, 1), jnp.float32), ((tm, npad), jnp.bfloat16),
              ((npad, chid), jnp.float32), ((chid, cemb), jnp.float32),
              ((1, cemb), jnp.float32), ((cemb, cout), jnp.float32),
              ((1, cout), jnp.float32), ((tm, 1), jnp.float32),
              ((tm, cemb), jnp.float32), ((1, cemb), jnp.float32),
              ((1, cout), jnp.float32)]
    return pl.pallas_call(
        _tail_kernel,
        grid=(npad // tm,),
        in_specs=[pl.BlockSpec((tm, 1), lambda i: (i, 0)),
                  pl.BlockSpec((tm, npad), lambda i: (i, 0)),
                  pl.BlockSpec((npad, chid), lambda i: (0, 0)),
                  pl.BlockSpec((chid, cemb), lambda i: (0, 0)),
                  pl.BlockSpec((1, cemb), lambda i: (0, 0)),
                  pl.BlockSpec((cemb, cout), lambda i: (0, 0)),
                  pl.BlockSpec((1, cout), lambda i: (0, 0)),
                  pl.BlockSpec((tm, 1), lambda i: (i, 0))],
        out_specs=(pl.BlockSpec((tm, cemb), lambda i: (i, 0)),
                   pl.BlockSpec((1, cemb), lambda i: (0, 0)),
                   pl.BlockSpec((1, cout), lambda i: (0, 0))),
        out_shape=(jax.ShapeDtypeStruct((npad, cemb), jnp.float32),
                   jax.ShapeDtypeStruct((1, cemb), jnp.float32),
                   jax.ShapeDtypeStruct((1, cout), jnp.float32)),
        compiler_params=pltpu.CompilerParams(
            dimension_semantics=("arbitrary",),   # gemb/pred output blocks revisited
            vmem_limit_bytes=_vmem_limit(blocks)),
    )(dinv.reshape(-1, 1), an, y, we, be, wl, bl, mask)


def adj_square(a):
    npad = a.shape[0]
    tm = tn = _row_tile(npad)
    tk = 512 if (npad % 512 == 0 and npad > 512) else tm
    blocks = [((tm, tk), jnp.float32), ((tk, tn), jnp.float32),
              ((tm, tn), jnp.float32), ((tm, tn), jnp.float32),
              ((tm, tn), jnp.float32)]
    return pl.pallas_call(
        _adj_sq_kernel,
        grid=(npad // tm, npad // tn, npad // tk),
        in_specs=[pl.BlockSpec((tm, tk), lambda i, j, k: (i, k)),
                  pl.BlockSpec((tk, tn), lambda i, j, k: (k, j)),
                  pl.BlockSpec((tm, tn), lambda i, j, k: (i, j))],
        out_specs=pl.BlockSpec((tm, tn), lambda i, j, k: (i, j)),
        out_shape=jax.ShapeDtypeStruct((npad, npad), jnp.float32),
        scratch_shapes=[pltpu.VMEM((tm, tn), jnp.float32)],
        compiler_params=pltpu.CompilerParams(
            dimension_semantics=("parallel", "parallel", "arbitrary"),
            vmem_limit_bytes=_vmem_limit(blocks)),
    )(a, a, a)


# --------------------------------------------------------------------------- glue
def _dinv(a):
    # gcn_norm degree with the (folded) self loop: deg_i = sum_j A_ij + 1
    return jax.lax.rsqrt(jnp.sum(a, axis=1) + 1.0)


def topk_pool(a2, x, score_col, n_real, ratio):
    """TopKPooling given the packed (tanh'd) score lane: top-k (static k), gate the
    kept features by their score, filter_adj as a dense row+column gather, re-pad."""
    score = x[:n_real, score_col]
    k = int(math.ceil(ratio * n_real))                 # static at Python time
    gate, perm = jax.lax.top_k(score, k)               # descending, like PyG topk()
    a_p = a2[perm][:, perm]                            # filter_adj
    x_p = x[perm] * gate[:, None]                      # gate kept features
    npad = _pad_nodes(k)
    return _pad2(a_p, npad, npad), _pad2(x_p, npad, x.shape[1]), k


def graph_unet_forward(params, x, edge_index, depth, pool_ratios):
    dims = params["dims"]
    hid, emb, out_c = dims["hid"], dims["emb"], dims["out"]
    n = x.shape[0]

    # batch=None -> single graph; edge_weight = ones; dense A[dst, src], zero diagonal.
    ew = jnp.ones((edge_index.shape[1],), jnp.float32)
    a = jnp.zeros((n, n), jnp.float32).at[edge_index[1], edge_index[0]].add(ew)
    a = a * (1.0 - jnp.eye(n, dtype=jnp.float32))      # remove_self_loops semantics

    npad = _pad_nodes(n)
    a = _pad2(a, npad, npad)
    x = _pad2(x, npad, params["w"][0].shape[0])

    def conv_pair(a_pad, x_pad, idx, p_hat):
        dinv = _dinv(a_pad)
        an, h = gcn_first(a_pad, dinv, x_pad, params["w"][idx], params["b"][idx])
        y = gcn_second(an, dinv, h, params["w"][idx + 1], params["b"][idx + 1],
                       p_hat, score_col=hid)
        return an, dinv, y

    # down_convs[0], down_convs[1] + act, score for pools[0] packed into lane `hid`
    _, _, x = conv_pair(a, x, 0, params["p_hat"][0])

    z = gemb = preds = None
    for i in range(1, depth + 1):
        a = adj_square(a)                              # augment_adj on the dense adjacency
        a, x, n = topk_pool(a, x, hid, n, pool_ratios[i - 1])
        idx = 2 * i
        if i < depth:
            _, _, x = conv_pair(a, x, idx, params["p_hat"][i])
        else:
            an, dinv, y = conv_pair(a, x, idx, params["p_hat_zero"])
            npad = a.shape[0]
            mask = ((jnp.arange(npad) < n).astype(jnp.float32) / n).reshape(-1, 1)
            z, gemb, preds = tail(an, dinv, y, params["emb_w"], params["emb_b"],
                                  params["lin_w"], params["lin_b"], mask)
            x = z

    # (preds, node embeddings, final adjacency [dense analogue of edge_index], graph emb)
    return (preds[:, :out_c], z[:n, :emb], a[:n, :n], gemb[:, :emb])


# --------------------------------------------------------------------------- params
def init_params(key, in_c, hid, emb_dim, out_c, depth):
    """PyG-equivalent init (glorot weights, zero GCN bias, uniform pool weight),
    zero-padded to 128-lane slabs; the hidden width reserves one spare lane for
    the packed TopK score."""
    def glorot(k, shape):
        lim = math.sqrt(6.0 / (shape[0] + shape[1]))
        return jax.random.uniform(k, shape, jnp.float32, -lim, lim)

    in_cp = _rup(in_c, LANE)
    hidp = _rup(hid + 1, LANE)       # +1 -> guaranteed spare lane for the score
    embp = _rup(emb_dim, LANE)
    outp = _rup(out_c, LANE)

    n_convs = 2 + 2 * depth
    keys = jax.random.split(key, n_convs + depth + 2)
    w, b = [], []
    shapes = [(in_c, hid), (hid, hid)] + [(hid, hid)] * (2 * depth)
    pads = [(in_cp, hidp)] + [(hidp, hidp)] * (2 * depth + 1)
    for i, (shp, pshp) in enumerate(zip(shapes, pads)):
        w.append(_pad2(glorot(keys[i], shp), *pshp))
        b.append(jnp.zeros((1, pshp[1]), jnp.float32))        # GCNConv bias reset -> zeros
    p_hat = []
    for d in range(depth):
        lim = 1.0 / math.sqrt(hid)
        p = jax.random.uniform(keys[n_convs + d], (hid,), jnp.float32, -lim, lim)
        p = p / jnp.maximum(jnp.sqrt(jnp.sum(p * p)), 1e-12)  # fold ||p|| once
        p_hat.append(_pad2(p.reshape(1, hid), 1, hidp))
    emb_w = _pad2(glorot(keys[n_convs + depth], (hid, emb_dim)), hidp, embp)
    emb_b = jnp.zeros((1, embp), jnp.float32)
    lim = 1.0 / math.sqrt(emb_dim)
    lin_w = _pad2(jax.random.uniform(keys[n_convs + depth + 1], (emb_dim, out_c),
                                     jnp.float32, -lim, lim), embp, outp)
    lin_b = jnp.zeros((1, outp), jnp.float32)
    return dict(w=w, b=b, p_hat=p_hat,
                p_hat_zero=jnp.zeros((1, hidp), jnp.float32),
                emb_w=emb_w, emb_b=emb_b, lin_w=lin_w, lin_b=lin_b,
                dims=dict(in_c=in_c, hid=hid, emb=emb_dim, out=out_c))


# --------------------------------------------------------------------------- main
if __name__ == "__main__":
    N, IN_C, HID, EMB, OUT, DEPTH = 16, 8, 32, 16, 4, 2
    POOL_RATIOS = (0.5, 0.5)

    key = jax.random.PRNGKey(0)
    kx, kp = jax.random.split(key)

    # deterministic undirected graph: ring + chord-3, both directions, no self loops
    src, dst = [], []
    for i in range(N):
        for d in (1, 3):
            j = (i + d) % N
            src += [i, j]
            dst += [j, i]
    edge_index = jnp.array([src, dst], dtype=jnp.int32)     # [2, 64]

    x = jax.random.normal(kx, (N, IN_C), jnp.float32)
    params = init_params(kp, IN_C, HID, EMB, OUT, DEPTH)

    preds, x_nodes, a_final, graph_emb = graph_unet_forward(
        params, x, edge_index, DEPTH, POOL_RATIOS)
    jax.block_until_ready((preds, x_nodes, a_final, graph_emb))

    assert preds.shape == (1, OUT)
    assert graph_emb.shape == (1, EMB)
    assert x_nodes.shape == (4, EMB)      # 16 -> 8 -> 4 nodes after two 0.5 poolings
    assert a_final.shape == (4, 4)
    print("KERNEL_OK")
</pallas_src>

<mosaic_0001>
module attributes {stable_mosaic.version = 11 : i64} {
  func.func @_gcn_first_kernel(%arg0: i32, %arg1: memref<16x1xf32, #tpu.memory_space<vmem>>, %arg2: memref<1x16xf32, #tpu.memory_space<vmem>>, %arg3: memref<16x16xf32, #tpu.memory_space<vmem>>, %arg4: memref<16x128xf32, #tpu.memory_space<vmem>>, %arg5: memref<128x128xf32, #tpu.memory_space<vmem>>, %arg6: memref<1x128xf32, #tpu.memory_space<vmem>>, %arg7: memref<16x16xbf16, #tpu.memory_space<vmem>>, %arg8: memref<16x128xf32, #tpu.memory_space<vmem>>) attributes {dimension_semantics = [#tpu.dimension_semantics<parallel>], iteration_bounds = array<i64: 1>, scalar_prefetch = 0 : i64, scratch_operands = 0 : i64, tpu.core_type = #tpu.core_type<tc>, window_params = [{transform_indices = @transform_0, window_bounds = array<i64: 16, 1>}, {pipeline_mode = #tpu.pipeline_mode<synchronous>, transform_indices = @transform_1, window_bounds = array<i64: 1, 16>}, {transform_indices = @transform_2, window_bounds = array<i64: 16, 16>}, {pipeline_mode = #tpu.pipeline_mode<synchronous>, transform_indices = @transform_3, window_bounds = array<i64: 16, 128>}, {pipeline_mode = #tpu.pipeline_mode<synchronous>, transform_indices = @transform_4, window_bounds = array<i64: 128, 128>}, {pipeline_mode = #tpu.pipeline_mode<synchronous>, transform_indices = @transform_5, window_bounds = array<i64: 1, 128>}, {transform_indices = @transform_6, window_bounds = array<i64: 16, 16>}, {transform_indices = @transform_7, window_bounds = array<i64: 16, 128>}]} {
    %c0 = arith.constant 0 : index
    %c0_0 = arith.constant 0 : index
    %0 = vector.load %arg1[%c0, %c0_0] : memref<16x1xf32, #tpu.memory_space<vmem>>, vector<16x1xf32>
    %c0_1 = arith.constant 0 : index
    %c0_2 = arith.constant 0 : index
    %1 = vector.load %arg3[%c0_1, %c0_2] : memref<16x16xf32, #tpu.memory_space<vmem>>, vector<16x16xf32>
    %2 = vector.broadcast %0 : vector<16x1xf32> to vector<16x16xf32>
    %3 = arith.mulf %1, %2 : vector<16x16xf32>
    %c0_3 = arith.constant 0 : index
    %c0_4 = arith.constant 0 : index
    %4 = vector.load %arg2[%c0_3, %c0_4] : memref<1x16xf32, #tpu.memory_space<vmem>>, vector<1x16xf32>
    %5 = vector.broadcast %4 : vector<1x16xf32> to vector<16x16xf32>
    %6 = arith.mulf %3, %5 : vector<16x16xf32>
    %7 = arith.truncf %6 : vector<16x16xf32> to vector<16x16xbf16>
    %c0_5 = arith.constant 0 : index
    %c0_6 = arith.constant 0 : index
    %8 = vector.load %arg7[%c0_5, %c0_6] : memref<16x16xbf16, #tpu.memory_space<vmem>>, vector<16x16xbf16>
    tpu.vector_store %arg7[%c0_5, %c0_6], %7 {strides = array<i32>} : memref<16x16xbf16, #tpu.memory_space<vmem>>, vector<16x16xbf16>,
    %c16_i32 = arith.constant 16 : i32
    %9 = arith.muli %arg0, %c16_i32 : i32
    %10 = tpu.assume_multiple %9, 8 : i32
    %11 = arith.index_cast %10 : i32 to index
    %c0_7 = arith.constant 0 : index
    %12 = vector.load %arg4[%11, %c0_7] : memref<16x128xf32, #tpu.memory_space<vmem>>, vector<16x128xf32>
    %c0_8 = arith.constant 0 : index
    %c0_9 = arith.constant 0 : index
    %13 = vector.load %arg4[%c0_8, %c0_9] : memref<16x128xf32, #tpu.memory_space<vmem>>, vector<16x128xf32>
    %14 = arith.truncf %13 : vector<16x128xf32> to vector<16x128xbf16>
    %cst = arith.constant dense<0.000000e+00> : vector<16x128xf32>
    %15 = tpu.matmul %7, %14, %cst {dimension_numbers = #tpu.dot_dimension_numbers<[1], [0], [0], [1], [0, 0, 1, 1], [], []>} : vector<16x16xbf16>, vector<16x128xbf16>, vector<16x128xf32> -> vector<16x128xf32>
    %16 = arith.mulf %0, %0 : vector<16x1xf32>
    %17 = vector.broadcast %16 : vector<16x1xf32> to vector<16x128xf32>
    %18 = arith.mulf %17, %12 : vector<16x128xf32>
    %19 = arith.addf %15, %18 : vector<16x128xf32>
    %20 = arith.truncf %19 : vector<16x128xf32> to vector<16x128xbf16>
    %c0_10 = arith.constant 0 : index
    %c0_11 = arith.constant 0 : index
    %21 = vector.load %arg5[%c0_10, %c0_11] : memref<128x128xf32, #tpu.memory_space<vmem>>, vector<128x128xf32>
    %22 = arith.truncf %21 : vector<128x128xf32> to vector<128x128xbf16>
    %cst_12 = arith.constant dense<0.000000e+00> : vector<16x128xf32>
    %23 = tpu.matmul %20, %22, %cst_12 {dimension_numbers = #tpu.dot_dimension_numbers<[1], [0], [0], [1], [0, 0, 1, 1], [], []>} : vector<16x128xbf16>, vector<128x128xbf16>, vector<16x128xf32> -> vector<16x128xf32>
    %c0_13 = arith.constant 0 : index
    %c0_14 = arith.constant 0 : index
    %24 = vector.load %arg6[%c0_13, %c0_14] : memref<1x128xf32, #tpu.memory_space<vmem>>, vector<1x128xf32>
    %25 = vector.broadcast %24 : vector<1x128xf32> to vector<16x128xf32>
    %26 = arith.addf %23, %25 : vector<16x128xf32>
    %c0_15 = arith.constant 0 : index
    %c0_16 = arith.constant 0 : index
    %27 = vector.load %arg8[%c0_15, %c0_16] : memref<16x128xf32, #tpu.memory_space<vmem>>, vector<16x128xf32>
    tpu.vector_store %arg8[%c0_15, %c0_16], %26 {strides = array<i32>} : memref<16x128xf32, #tpu.memory_space<vmem>>, vector<16x128xf32>,
    return
  }
  func.func @transform_0(%arg0: i32) -> (i32, i32) {
    %c0_i32 = arith.constant 0 : i32
    %c0_i32_0 = arith.constant 0 : i32
    return %arg0, %c0_i32 : i32, i32
  }
  func.func @transform_1(%arg0: i32) -> (i32, i32) {
    %c0_i32 = arith.constant 0 : i32
    %c0_i32_0 = arith.constant 0 : i32
    %c0_i32_1 = arith.constant 0 : i32
    return %c0_i32, %c0_i32_0 : i32, i32
  }
  func.func @transform_2(%arg0: i32) -> (i32, i32) {
    %c0_i32 = arith.constant 0 : i32
    %c0_i32_0 = arith.constant 0 : i32
    return %arg0, %c0_i32 : i32, i32
  }
  func.func @transform_3(%arg0: i32) -> (i32, i32) {
    %c0_i32 = arith.constant 0 : i32
    %c0_i32_0 = arith.constant 0 : i32
    %c0_i32_1 = arith.constant 0 : i32
    return %c0_i32, %c0_i32_0 : i32, i32
  }
  func.func @transform_4(%arg0: i32) -> (i32, i32) {
    %c0_i32 = arith.constant 0 : i32
    %c0_i32_0 = arith.constant 0 : i32
    %c0_i32_1 = arith.constant 0 : i32
    return %c0_i32, %c0_i32_0 : i32, i32
  }
  func.func @transform_5(%arg0: i32) -> (i32, i32) {
    %c0_i32 = arith.constant 0 : i32
    %c0_i32_0 = arith.constant 0 : i32
    %c0_i32_1 = arith.constant 0 : i32
    return %c0_i32, %c0_i32_0 : i32, i32
  }
  func.func @transform_6(%arg0: i32) -> (i32, i32) {
    %c0_i32 = arith.constant 0 : i32
    %c0_i32_0 = arith.constant 0 : i32
    return %arg0, %c0_i32 : i32, i32
  }
  func.func @transform_7(%arg0: i32) -> (i32, i32) {
    %c0_i32 = arith.constant 0 : i32
    %c0_i32_0 = arith.constant 0 : i32
    return %arg0, %c0_i32 : i32, i32
  }
}

</mosaic_0001>

<bundles_post_ra>
// kernel: tpu_custom_call.1
= control target key start
LH: loop header
LB: loop body
LE: loop exit
PB: predicated region body
PF: predicated region fallthrough
CT: control target
= control target key end

     0   :  { %13 = vsyncpa [#allocation3], 0  ;;  %s554_s0 = inlined_call_operand.vmem [shape: f32[16,1], index: 0, kind: input, shape index: {}]   ;;  %s555_s1 = inlined_call_operand.vmem [shape: f32[1,16], index: 1, kind: input, shape index: {}]   ;;  %s556_s2 = inlined_call_operand.vmem [shape: f32[16,16], index: 2, kind: input, shape index: {}]   ;;  %s557_s3 = inlined_call_operand.hbm [shape: f32[16,128], index: 3, kind: input, shape index: {}]   ;;  %s558_s4 = inlined_call_operand.hbm [shape: f32[128,128], index: 4, kind: input, shape index: {}]   ;;  %s559_s5 = inlined_call_operand.vmem [shape: f32[1,128], index: 5, kind: input, shape index: {}]   ;;  %s560_s6 = inlined_call_operand.hbm [shape: bf16[16,16], index: 6, kind: output, shape index: {0}]   ;;  %s561_s7 = inlined_call_operand.hbm [shape: f32[16,128], index: 7, kind: output, shape index: {1}]  }
   0x1   :  { %14 = vsyncpa [#allocation6], 0 }
   0x2   :  { %15 = vsyncpa [#allocation4], 0 }
   0x3   :  { %16 = vsyncpa [#allocation9], 0  ;;  %s420_s24 = smov [#allocation2]   ;;  %s324_s28 = scalar_lea.hbm %s557_s3, 256 }
   0x4   :  { %s28_s25 = sshll.u32 %s420_s24, 4  ;;  %p325_p0 = scmp.ne.s32.totalorder %s557_s3, %s324_s28  ;;  %s29_s25 = int_to_ptr.vmem [resolvable:$true] %s28_s25 }
   0x5   :  { %p328_p1 = scmp.lt.u32.totalorder %s324_s28, %s557_s3 }
   0x7   :  { %p330_p2 = pnand %p328_p1, %p325_p0 }
   0x9   :  { %333 = shalt.err (!%p330_p2)
}
   0xa   :  { %s334_s10 = scalar_lea.vmem %s29_s25, 256  ;;  %p339_p4 = scmp.lt.s32.totalorder %s29_s25, %s29_s25 }
   0xb   :  { %p335_p3 = scmp.ne.s32.totalorder %s29_s25, %s334_s10  ;;  %p340_p5 = scmp.lt.s32.totalorder %s334_s10, %s334_s10 }
   0xd   :  { %p341_p6 = por %p340_p5, %p339_p4 }
   0xf   :  { %p342_p7 = pnand %p341_p6, %p335_p3 }
  0x11   :  { %345 = shalt.err (!%p342_p7)
}
  0x12   :  { %s421_s11 = smov 128   ;;  %s422_s12 = smov 8  }
  0x13   :  { %34 = dma.hbm_to_vmem [thread:$0]  %s557_s3, 256, %s29_s25, [#allocation3], %s421_s11, %s421_s11, %s422_s12  }
  0x14   :  { %s423_s15 = smov [#allocation5]   ;;  %s346_s19 = scalar_lea.hbm %s558_s4, 2048 }
  0x15   :  { %s40_s16 = sshll.u32 %s423_s15, 4  ;;  %p347_p8 = scmp.ne.s32.totalorder %s558_s4, %s346_s19  ;;  %s41_s16 = int_to_ptr.vmem [resolvable:$true] %s40_s16 }
  0x16   :  { %p350_p9 = scmp.lt.u32.totalorder %s346_s19, %s558_s4 }
  0x18   :  { %p352_p10 = pnand %p350_p9, %p347_p8 }
  0x1a   :  { %355 = shalt.err (!%p352_p10)
}
  0x1b   :  { %s356_s24 = scalar_lea.vmem %s41_s16, 2048  ;;  %p361_p12 = scmp.lt.s32.totalorder %s41_s16, %s41_s16 }
  0x1c   :  { %p357_p11 = scmp.ne.s32.totalorder %s41_s16, %s356_s24  ;;  %p362_p13 = scmp.lt.s32.totalorder %s356_s24, %s356_s24 }
  0x1e   :  { %p363_p0 = por %p362_p13, %p361_p12 }
  0x20   :  { %p364_p1 = pnand %p363_p0, %p357_p11 }
  0x22   :  { %367 = shalt.err (!%p364_p1)
}
  0x23   :  { %46 = dma.hbm_to_vmem [thread:$0]  %s558_s4, 2048, %s41_s16, [#allocation6], %s421_s11, %s421_s11, %s422_s12  }
  0x24   :  { %412 = dma.done.wait [#allocation3], 256  }
  0x25   :  { %413 = vsyncadd [#allocation3], 4294967040 }
  0x26   :  { %414 = dma.done.wait [#allocation6], 2048  }
  0x27   :  { %415 = vsyncadd [#allocation6], 4294965248  ;;  %v424_v0 = vmov 0   ;;  %v56_v1 = vld [vmem:[%s554_s0] sm:$0xff]  ;;  %v57_v2 = vld [vmem:[%s554_s0 + $0x8] sm:$0xff]  ;;  %v425_v6 = vmov 0.0  }
  0x28   :  { %322 = vset.pattern.permute.xlu0 %v424_v0  ;;  %323 = vset.pattern.permute.xlu1 %v424_v0  ;;  %v507_v3 = vld [vmem:[#allocation2] sm:$0xff]  ;;  %v509_v4 = vld [vmem:[#allocation2 + $0x8] sm:$0xff]  ;;  %vm426_vm0 = vmmov 0   ;;  %v99_v7 = vmul.f32 %v56_v1, %v56_v1  ;;  %v159_v8 = vld [vmem:[#allocation5] sm:$0xff]  ;;  %v100_v13 = vmul.f32 %v57_v2, %v57_v2  ;;  %vm89_vm1 = vcmask 125952  }
  0x29   :  { %62 = vperm.xlu0 %322, %v56_v1   ;;  %v98_v5 = vpack.c.bf16 %v509_v4, %v507_v3  ;;  %285 = vmatprep.subr.bf16.mxu0 %v425_v6  ;;  %v160_v9 = vld [vmem:[#allocation5 + $0x8] sm:$0xff]  ;;  %v161_v10 = vld [vmem:[#allocation5 + $0x10] sm:$0xff]  ;;  %v162_v12 = vld [vmem:[#allocation5 + $0x18] sm:$0xff]  ;;  %vm113_vm2 = vcmask 130048  }
  0x2a   :  { %291 = vmatprep.subr.bf16.mxu1 %v425_v6  ;;  %287 = vmatprep.mubr.msk.bf16.mxu0 %vm426_vm0, %v425_v6  ;;  %v175_v11 = vpack.c.bf16 %v160_v9, %v159_v8  ;;  %v176_v14 = vpack.c.bf16 %v162_v12, %v161_v10  ;;  %v163_v15 = vld [vmem:[#allocation5 + $0x20] sm:$0xff]  ;;  %v164_v16 = vld [vmem:[#allocation5 + $0x28] sm:$0xff]  ;;  %v165_v18 = vld [vmem:[#allocation5 + $0x30] sm:$0xff] }
  0x2b   :  { %286 = vmatpush3.bf16.msra.mxu0 %v98_v5  ;;  %307 = vmatprep.mubr.msk.bf16.mxu1 %vm426_vm0, %v425_v6  ;;  %v177_v17 = vpack.c.bf16 %v164_v16, %v163_v15  ;;  %v166_v19 = vld [vmem:[#allocation5 + $0x38] sm:$0xff]  ;;  %v167_v21 = vld [vmem:[#allocation5 + $0x40] sm:$0xff]  ;;  %v168_v22 = vld [vmem:[#allocation5 + $0x48] sm:$0xff] }
  0x2c   :  { %103 = vperm.xlu1 %323, %v99_v7   ;;  %292 = vmatpush3.bf16.msra.mxu1 %v175_v11  ;;  %v178_v20 = vpack.c.bf16 %v166_v19, %v165_v18  ;;  %v179_v23 = vpack.c.bf16 %v168_v22, %v167_v21  ;;  %v169_v24 = vld [vmem:[#allocation5 + $0x50] sm:$0xff]  ;;  %v170_v25 = vld [vmem:[#allocation5 + $0x58] sm:$0xff]  ;;  %v58_v27 = vld [vmem:[%s556_s2] sm:$0xff] }
  0x2d   :  { %67 = vperm.xlu0 %322, %v57_v2   ;;  %293 = vmatprep.subr.bf16.mxu1 %v425_v6  ;;  %v180_v26 = vpack.c.bf16 %v170_v25, %v169_v24  ;;  %v267_v28 = vld [vmem:[%s555_s1] ss:$0 sm:$0xff]  ;;  %v59_v31 = vld [vmem:[%s556_s2 + $0x8] sm:$0xff]  ;;  %v173_v42 = vld [vmem:[#allocation5 + $0x70] sm:$0xff]  ;;  %s427_s1 = smov [#allocation7]  }
  0x2e   :  { %v171_v39 = vld [vmem:[#allocation5 + $0x60] sm:$0xff]  ;;  %v172_v40 = vld [vmem:[#allocation5 + $0x68] sm:$0xff]  ;;  %v174_v43 = vld [vmem:[#allocation5 + $0x78] sm:$0xff]  ;;  %s238_s2 = sshll.u32 %s427_s1, 4  ;;  %s239_s2 = int_to_ptr.vmem [resolvable:$true] %s238_s2 }
  0x2f   :  { %v181_v41 = vpack.c.bf16 %v172_v40, %v171_v39  ;;  %v182_v44 = vpack.c.bf16 %v174_v43, %v173_v42  ;;  %s368_s13 = scalar_lea.vmem %s239_s2, 128  ;;  %p373_p3 = scmp.lt.s32.totalorder %s239_s2, %s239_s2 }
  0x30   :  { %108 = vperm.xlu1 %323, %v100_v13   ;;  %294 = vmatpush3.bf16.msra.mxu1 %v176_v14  ;;  %p369_p2 = scmp.ne.s32.totalorder %s239_s2, %s368_s13  ;;  %p374_p4 = scmp.lt.s32.totalorder %s368_s13, %s368_s13 }
  0x31   :  { %295 = vmatprep.subr.bf16.mxu1 %v425_v6 }
  0x32   :  { %p375_p5 = por %p374_p4, %p373_p3 }
  0x34   :  { %296 = vmatpush3.bf16.msra.mxu1 %v177_v17  ;;  %p376_p6 = pnand %p375_p5, %p369_p2 }
  0x35   :  { %297 = vmatprep.subr.bf16.mxu1 %v425_v6 }
  0x38   :  { %298 = vmatpush3.bf16.msra.mxu1 %v178_v20 }
  0x39   :  { %299 = vmatprep.subr.bf16.mxu1 %v425_v6 }
  0x3c   :  { %300 = vmatpush3.bf16.msra.mxu1 %v179_v23 }
  0x3d   :  { %301 = vmatprep.subr.bf16.mxu1 %v425_v6 }
  0x40   :  { %302 = vmatpush3.bf16.msra.mxu1 %v180_v26 }
  0x41   :  { %303 = vmatprep.subr.bf16.mxu1 %v425_v6 }
  0x44   :  { %304 = vmatpush3.bf16.msra.mxu1 %v181_v41 }
  0x45   :  { %305 = vmatprep.subr.bf16.mxu1 %v425_v6 }
  0x48   :  { %306 = vmatpush3.bf16.msra.mxu1 %v182_v44 }
  0xa8   :  { %v63_v29 = vpop.permute.xlu0 %62 }
  0xa9   :  { %v70_v30 = vmul.f32 %v63_v29, %v58_v27 }
  0xab   :  { %v79_v32 = vmul.f32 %v267_v28, %v70_v30  ;;  %v104_v45 = vpop.permute.xlu1 %103 }
  0xac   :  { %v68_v33 = vpop.permute.xlu0 %67  ;;  %v111_v48 = vmul.f32 %v104_v45, %v507_v3 }
  0xad   :  { %v272_v34 = vpack.c.bf16 %v79_v32, %v79_v32  ;;  %v71_v35 = vmul.f32 %v68_v33, %v59_v31 }
  0xaf   :  { %v80_v36 = vmul.f32 %v267_v28, %v71_v35  ;;  %90 = vst.msk [vmem:[#allocation7] sm:$0xf] %vm89_vm1, %v272_v34  ;;  %v109_v46 = vpop.permute.xlu1 %108 }
  0xb0   :  { %v112_v49 = vmul.f32 %v109_v46, %v509_v4 }
  0xb1   :  { %v81_v37 = vpack.c.bf16 %v80_v36, %v79_v32  ;;  %v273_v38 = vpack.c.bf16 %v80_v36, %v80_v36 }
  0xb3   :  { %288 = vmatmul.mubr.msk.bf16.vlgmr.msra.gmra.mrb[0].mxu0 %vm113_vm2, %v81_v37  ;;  %91 = vst.msk [vmem:[#allocation7 + $0x4] sm:$0xf] %vm89_vm1, %v273_v38 }
 0x186   :  { %v151_v47 = vpop.f32.mrb[0].mxu0 }
 0x187   :  { %v289_v50 = vpop.f32.mrb[1].mxu0  ;;  %v152_v52 = vadd.f32 %v151_v47, %v111_v48 }
 0x188   :  { %v154_v51 = vpop.f32.mrb[2].mxu0 }
 0x189   :  { %v155_v53 = vadd.f32 %v154_v51, %v112_v49  ;;  %v290_v54 = vpop.f32.mrb[3].mxu0 }
 0x18b   :  { %v158_v55 = vpack.c.bf16 %v155_v53, %v152_v52 }
 0x18d   :  { %308 = vmatmul.mubr.bf16.vlgmr.msra.gmra.mrb[0].mxu1 %v158_v55 }
 0x18e   :  { %379 = shalt.err (!%p376_p6)
}
 0x18f   :  { %s380_s16 = scalar_lea.hbm %s560_s6, 128 }
 0x190   :  { %p381_p7 = scmp.ne.s32.totalorder %s560_s6, %s380_s16  ;;  %p384_p8 = scmp.lt.u32.totalorder %s380_s16, %s560_s6 }
 0x192   :  { %p386_p9 = pnand %p384_p8, %p381_p7 }
 0x194   :  { %389 = shalt.err (!%p386_p9)
}
 0x195   :  { %s428_s21 = smov 64   ;;  %s429_s22 = smov 4   ;;  %v271_v56 = vld [vmem:[%s559_s5] ss:$0 sm:$0xff] }
 0x196   :  { %244 = dma.vmem_to_hbm [thread:$0]  %s239_s2, 128, %s560_s6, [#allocation4], %s428_s21, %s428_s21, %s429_s22  }
 0x197   :  { %s430_s26 = smov [#allocation8]  }
 0x198   :  { %s250_s27 = sshll.u32 %s430_s26, 4  ;;  %s251_s27 = int_to_ptr.vmem [resolvable:$true] %s250_s27 }
 0x199   :  { %s390_s28 = scalar_lea.vmem %s251_s27, 256  ;;  %p395_p11 = scmp.lt.s32.totalorder %s251_s27, %s251_s27 }
 0x19a   :  { %p391_p10 = scmp.ne.s32.totalorder %s251_s27, %s390_s28  ;;  %p396_p12 = scmp.lt.s32.totalorder %s390_s28, %s390_s28 }
 0x19c   :  { %p397_p13 = por %p396_p12, %p395_p11 }
 0x19e   :  { %p398_p0 = pnand %p397_p13, %p391_p10 }
 0x260   :  { %v224_v57 = vpop.f32.mrb[0].mxu1 }
 0x261   :  { %v225_v58 = vadd.f32 %v271_v56, %v224_v57  ;;  %v309_v59 = vpop.f32.mrb[1].mxu1 }
 0x262   :  { %v227_v60 = vpop.f32.mrb[2].mxu1 }
 0x263   :  { %231 = vst [vmem:[#allocation8] sm:$0xff] %v225_v58  ;;  %v228_v61 = vadd.f32 %v271_v56, %v227_v60  ;;  %v310_v62 = vpop.f32.mrb[3].mxu1 }
 0x265   :  { %232 = vst [vmem:[#allocation8 + $0x8] sm:$0xff] %v228_v61 }
 0x266   :  { %401 = shalt.err (!%p398_p0)
}
 0x267   :  { %s402_s29 = scalar_lea.hbm %s561_s7, 256 }
 0x268   :  { %p403_p1 = scmp.ne.s32.totalorder %s561_s7, %s402_s29  ;;  %p406_p2 = scmp.lt.u32.totalorder %s402_s29, %s561_s7 }
 0x26a   :  { %p408_p3 = pnand %p406_p2, %p403_p1 }
 0x26c   :  { %411 = shalt.err (!%p408_p3)
}
 0x26d   :  { %256 = dma.vmem_to_hbm [thread:$0]  %s251_s27, 256, %s561_s7, [#allocation9], %s421_s11, %s421_s11, %s422_s12  }
 0x26e   :  { %416 = dma.done.wait [#allocation4], 128  }
 0x26f   :  { %417 = vsyncadd [#allocation4], 4294967168 }
 0x270   :  { %418 = dma.done.wait [#allocation9], 256  }
 0x271   :  { %419 = vsyncadd [#allocation9], 4294967040 }
 0x272   :  { %263 = vsyncpa [#allocation3], 1 }
 0x273   :  { %264 = vsyncpa [#allocation6], 1 }
 0x274   :  { %265 = vsyncpa [#allocation4], 1 }
 0x275   :  { %266 = vsyncpa [#allocation9], 1 }

</bundles_post_ra>
